<compile_context>
chip_gen: v6e
topology: v6e:2x2x1
jax: 0.10.0
libtpu: 0.0.40
codegen_flags: <defaults>
</compile_context>

<pallas_src>
import jax
import jax.numpy as jnp
from jax.experimental import pallas as pl
from jax.experimental.pallas import tpu as pltpu


def _add_pe_kernel(x_ref, pe_ref, o_ref):
    # x_ref: (1, tR, C) in x.dtype; pe_ref: (1, tR, C) f32; o_ref: (1, tR, C).
    o_ref[...] = (x_ref[...].astype(jnp.float32) + pe_ref[...]).astype(o_ref.dtype)


def make_positional_encoding_table(model_max_sequence: int, d_model: int):
    """Mirror of the PyTorch module's __init__ buffer (f32, shape (S, D))."""
    assert d_model % 2 == 0, "d_model must be even"
    depth = d_model / 2.0
    position = jnp.arange(model_max_sequence, dtype=jnp.float32)[:, None]   # (S, 1)
    depths = jnp.arange(d_model // 2, dtype=jnp.float32)[None, :] / depth   # (1, D/2)
    angle_rate = 1.0 / (10000.0 ** depths)
    angle_rads = position * angle_rate                                       # (S, D/2)
    pe = jnp.zeros((model_max_sequence, d_model), jnp.float32)
    pe = pe.at[:, 0::2].set(jnp.sin(angle_rads))
    pe = pe.at[:, 1::2].set(jnp.cos(angle_rads))
    return pe


# ~1 MiB of f32 per block buffer; with double-buffered x / pe / out that is
# ~6 MiB of VMEM, comfortably under the scoped-VMEM default on all generations
# (including v7x's 64 MiB physical / 32 MiB default scoped VMEM).
_TARGET_BLOCK_ELEMS = 256 * 1024


@jax.jit
def positional_encoding(x, pe_table):
    """x: (B, L, D); pe_table: (S >= L, D) float32.  Returns x + pe[:L]."""
    B, L, D = x.shape
    pe = pe_table[:L].astype(jnp.float32)                                    # (L, D)

    N = L * D
    if N % 128 == 0:
        # Lane-dense view: last dim is exactly 128 lanes regardless of D.
        C = 128
        R = N // 128
    else:
        # Fallback: keep the model dim as the (full-extent) lane axis.
        C = D
        R = L
    x_v = x.reshape(B, R, C)
    pe_v = pe.reshape(1, R, C)

    # Row-tile size: multiple of 8 sublanes, or the full extent if R is small.
    tR = max(8, (_TARGET_BLOCK_ELEMS // C) // 8 * 8)
    if tR >= R:
        tR = R

    grid = (pl.cdiv(R, tR), B)   # batch innermost -> PE tile reused across B

    out = pl.pallas_call(
        _add_pe_kernel,
        out_shape=jax.ShapeDtypeStruct((B, R, C), x.dtype),
        grid_spec=pltpu.PrefetchScalarGridSpec(
            num_scalar_prefetch=0,
            grid=grid,
            in_specs=[
                pl.BlockSpec((1, tR, C), lambda r, b: (b, r, 0)),   # x
                pl.BlockSpec((1, tR, C), lambda r, b: (0, r, 0)),   # pe (b-invariant)
            ],
            out_specs=pl.BlockSpec((1, tR, C), lambda r, b: (b, r, 0)),
        ),
        input_output_aliases={0: 0},   # in-place add: reuse the x buffer
        compiler_params=pltpu.CompilerParams(
            dimension_semantics=("parallel", "parallel"),
        ),
    )(x_v, pe_v)

    return out.reshape(B, L, D)


if __name__ == "__main__":
    # small config: d_model=32, model_max_sequence=16; input batch=2, seq=8
    B, L, D = 2, 8, 32
    MAX_SEQ = 16

    key = jax.random.PRNGKey(0)
    x = jax.random.normal(key, (B, L, D), dtype=jnp.float32)
    pe_table = make_positional_encoding_table(MAX_SEQ, D)

    out = jax.block_until_ready(positional_encoding(x, pe_table))
    ref = x + pe_table[None, :L, :]
    assert out.shape == (B, L, D)
    assert jnp.allclose(out, ref, atol=1e-5, rtol=1e-5), "mismatch (lane-dense path)"

    # Also exercise the fallback path where L*D is not a multiple of 128.
    B2, L2, D2 = 2, 6, 20
    x2 = jax.random.normal(jax.random.PRNGKey(0), (B2, L2, D2), dtype=jnp.float32)
    pe_table2 = make_positional_encoding_table(MAX_SEQ, D2)
    out2 = jax.block_until_ready(positional_encoding(x2, pe_table2))
    ref2 = x2 + pe_table2[None, :L2, :]
    assert jnp.allclose(out2, ref2, atol=1e-5, rtol=1e-5), "mismatch (fallback path)"

    print("KERNEL_OK")
</pallas_src>

<mosaic_0001>
module attributes {stable_mosaic.version = 11 : i64} {
  func.func @_add_pe_kernel(%arg0: i32, %arg1: i32, %arg2: memref<1x2x128xf32, #tpu.memory_space<vmem>>, %arg3: memref<1x2x128xf32, #tpu.memory_space<vmem>>, %arg4: memref<1x2x128xf32, #tpu.memory_space<vmem>>) attributes {dimension_semantics = [#tpu.dimension_semantics<parallel>, #tpu.dimension_semantics<parallel>], iteration_bounds = array<i64: 1, 2>, scalar_prefetch = 0 : i64, scratch_operands = 0 : i64, tpu.core_type = #tpu.core_type<tc>, window_params = [{transform_indices = @transform_0, window_bounds = array<i64: 1, 2, 128>}, {transform_indices = @transform_1, window_bounds = array<i64: 1, 2, 128>}, {transform_indices = @transform_2, window_bounds = array<i64: 1, 2, 128>}]} {
    %c0 = arith.constant 0 : index
    %c0_0 = arith.constant 0 : index
    %c0_1 = arith.constant 0 : index
    %0 = vector.load %arg2[%c0, %c0_0, %c0_1] : memref<1x2x128xf32, #tpu.memory_space<vmem>>, vector<1x2x128xf32>
    %c0_2 = arith.constant 0 : index
    %c0_3 = arith.constant 0 : index
    %c0_4 = arith.constant 0 : index
    %1 = vector.load %arg3[%c0_2, %c0_3, %c0_4] : memref<1x2x128xf32, #tpu.memory_space<vmem>>, vector<1x2x128xf32>
    %2 = arith.addf %0, %1 : vector<1x2x128xf32>
    %c0_5 = arith.constant 0 : index
    %c0_6 = arith.constant 0 : index
    %c0_7 = arith.constant 0 : index
    %3 = vector.load %arg4[%c0_5, %c0_6, %c0_7] : memref<1x2x128xf32, #tpu.memory_space<vmem>>, vector<1x2x128xf32>
    tpu.vector_store %arg4[%c0_5, %c0_6, %c0_7], %2 {strides = array<i32>} : memref<1x2x128xf32, #tpu.memory_space<vmem>>, vector<1x2x128xf32>,
    return
  }
  func.func @transform_0(%arg0: i32, %arg1: i32) -> (i32, i32, i32) {
    %c0_i32 = arith.constant 0 : i32
    %c0_i32_0 = arith.constant 0 : i32
    return %arg1, %arg0, %c0_i32 : i32, i32, i32
  }
  func.func @transform_1(%arg0: i32, %arg1: i32) -> (i32, i32, i32) {
    %c0_i32 = arith.constant 0 : i32
    %c0_i32_0 = arith.constant 0 : i32
    %c0_i32_1 = arith.constant 0 : i32
    return %c0_i32, %arg0, %c0_i32_0 : i32, i32, i32
  }
  func.func @transform_2(%arg0: i32, %arg1: i32) -> (i32, i32, i32) {
    %c0_i32 = arith.constant 0 : i32
    %c0_i32_0 = arith.constant 0 : i32
    return %arg1, %arg0, %c0_i32 : i32, i32, i32
  }
}

</mosaic_0001>

<bundles_post_ra>
// kernel: positional_encoding.1
= control target key start
LH: loop header
LB: loop body
LE: loop exit
PB: predicated region body
PF: predicated region fallthrough
CT: control target
= control target key end

     0   :  { %s354_s9 = smov 0   ;;  %s331_s10 = smov 0   ;;  %s368_s0 = inlined_call_operand.vmem [shape: f32[2,2,128], index: 0, kind: input, shape index: {}, may-alias: {0,2}]   ;;  %s369_s1 = inlined_call_operand.vmem [shape: f32[1,2,128], index: 1, kind: input, shape index: {}]   ;;  %s370_s2 = inlined_call_operand.vmem [shape: f32[2,2,128], index: 2, kind: output, shape index: {}, may-alias: {0,2}]  }
   0x1   :  { %s335_s11 = smov 0  }
   0x2 LB: > { %s21_s12 = sadd.s32 1, %s333_s10  ;;  %p286_p0 = scmp.ge.s32.totalorder %s337_s11, 1  ;;  %s337_s11 = sphi %s335_s11, %s12_s11   ;;  %s333_s10 = sphi %s331_s10, %s332_s10   ;;  %s329_s9 = sphi %s354_s9, %s371_s9  }
   0x3   : > { %p22_p1 = scmp.ge.s32.totalorder %s21_s12, 2  ;;  %p139_p2 = scmp.lt.s32.totalorder %s337_s11, 3 }
   0x5   : > { %s373_s12 = smov (%p22_p1, %s21_s12), 0  ;;  %p140_p3 = pnand %p286_p0, %p139_p2 }
   0x6   : > { %p169_p4 = scmp.lt.s32.totalorder (!%p140_p3), %s329_s9, 1 }
   0x7   : > { %143 = sbr.rel (%p140_p3) target bundleno = 19 (0x13), region = 28 }
   0xc   : > { %s375_s9 = smov (!%p169_p4, %s329_s9), 1  ;;  %v188_v0 = vld [vmem:[%s369_s1] sm:$0x3] }
   0xd   : > { %s287_s13 = sshll.u32 %s375_s9, 1 }
   0xe   : > { %s175_s18 = scalar_lea.vmem %s368_s0, %s287_s13  ;;  %s186_s21 = scalar_lea.vmem %s370_s2, %s287_s13 }
   0xf   : > { %v187_v1 = vld [vmem:[%s175_s18] sm:$0x3] }
  0x10   : > { %v189_v2 = vadd.f32 %v188_v0, %v187_v1 }
  0x12   : > { %190 = vst [vmem:[%s186_s21] sm:$0x3] %v189_v2 }
  0x13 PF: > { %s12_s11 = sadd.s32 1, %s337_s11   ;;  %s371_s9 = smov %s333_s10 }
  0x14   : > { %p9_p5 = scmp.ge.s32.totalorder %s12_s11, 4   ;;  %s332_s10 = smov %s373_s12  }
  0x16   :  { %11 = sbr.rel (!%p9_p5) target bundleno = 2 (0x2), region = 61 }

</bundles_post_ra>
